<compile_context>
chip_gen: v7x
topology: tpu7x:2x2x1
jax: 0.10.0
libtpu: 0.0.40
codegen_flags: <defaults>
</compile_context>

<pallas_src>
import functools

import jax
import jax.numpy as jnp
from jax.experimental import pallas as pl
from jax.experimental.pallas import tpu as pltpu

LAYER_DIMS = [(136, 100), (100, 50), (50, 50), (50, 25), (25, 5)]
IN_DIM = 136
LANE = 128
OUT_FEATURES = 5


def _round_up(x, m):
    return ((x + m - 1) // m) * m


def _device_kind():
    try:
        return jax.devices()[0].device_kind.lower()
    except Exception:  # pragma: no cover - defensive, keeps CPU interpret usable
        return ""


# ---------------------------------------------------------------------------
# Kernel: full 5-layer MLP on one (TB, 136) batch tile.  Weights are already
# (in_pad, out_pad) bf16; biases are (1, out_pad) f32.  Fully unrolled so MXU
# (matmul), VPU (bias add / fma) and EUP (tanh) co-issue.
# ---------------------------------------------------------------------------
def mlp_kernel(x_ref,
               w1_ref, b1_ref,
               w2_ref, b2_ref,
               w3_ref, b3_ref,
               w4_ref, b4_ref,
               w5_ref, b5_ref,
               o_ref, *, bf16_act):

    def act(z_f32):
        # sigmoid(z) = 0.5 * tanh(0.5 * z) + 0.5  -> single EUP op + VPU fma.
        if bf16_act:
            # bf16 EUP path (v6e / v7x): ~2x faster transcendentals.
            zb = z_f32.astype(jnp.bfloat16)
            return jnp.tanh(zb * 0.5) * 0.5 + 0.5          # stays bf16
        # f32 path (v5e and older: no bf16 VPU/EUP); cast only for the MXU.
        return (jnp.tanh(z_f32 * 0.5) * 0.5 + 0.5).astype(jnp.bfloat16)

    # bf16 into the MXU, f32 accumulation, bias add in f32.
    h = x_ref[...].astype(jnp.bfloat16)

    h = act(jnp.dot(h, w1_ref[...], preferred_element_type=jnp.float32) + b1_ref[...])
    h = act(jnp.dot(h, w2_ref[...], preferred_element_type=jnp.float32) + b2_ref[...])
    h = act(jnp.dot(h, w3_ref[...], preferred_element_type=jnp.float32) + b3_ref[...])
    h = act(jnp.dot(h, w4_ref[...], preferred_element_type=jnp.float32) + b4_ref[...])

    out = jnp.dot(h, w5_ref[...], preferred_element_type=jnp.float32) + b5_ref[...]
    # Lane-dense (TB, 128) store; bf16 halves the writeback vs f32.
    o_ref[...] = out.astype(o_ref.dtype)


# ---------------------------------------------------------------------------
# One-time parameter prep (off the per-call hot path):
#   torch-layout (out, in) f32  ->  transposed, zero-padded (in_pad, out_pad)
#   bf16 weights and (1, out_pad) f32 biases.
#
# INVARIANT: rows [fan_in:in_pad, :] of every weight are ZERO.  The padded
# activation lanes coming into each layer hold sigmoid(0) = 0.5 (not 0), so
# zero padded weight rows are what keeps the padding numerically inert.
# ---------------------------------------------------------------------------
def prepare_params(params):
    prepped = []
    in_pad = IN_DIM  # first layer consumes the raw 136-wide flattened input
    for (w, b) in params:
        fan_out, fan_in = w.shape
        out_pad = _round_up(fan_out, LANE)
        wt = jnp.zeros((in_pad, out_pad), jnp.float32).at[:fan_in, :fan_out].set(w.T)
        bp = jnp.zeros((1, out_pad), jnp.float32).at[0, :fan_out].set(b)
        prepped.append((wt.astype(jnp.bfloat16), bp))
        in_pad = out_pad  # next layer's input width is this layer's padded output
    return prepped


def neural_net_forward(x, prepped_params, *, tile_b=4096):
    """x: (B, 68, 2) float32 -> (B, 5) float32."""
    B = x.shape[0]
    flat = x.reshape(B, -1)  # == nn.Flatten()
    assert flat.shape[1] == IN_DIM

    kind = _device_kind()
    bf16_act = ("v6" in kind) or ("v7" in kind) or ("7x" in kind)
    two_cores = ("v7" in kind) or ("7x" in kind)

    # Balanced batch tiling: split B into near-equal, sublane-aligned tiles so
    # padding waste stays < 8 rows per tile instead of up to TB-1 rows.
    n_tiles = max(1, pl.cdiv(B, tile_b))
    if two_cores and B >= 16:
        # Megacore only helps with >=2 grid steps; keep the step count even.
        n_tiles = max(n_tiles, 2)
        if n_tiles % 2:
            n_tiles += 1
    TB = _round_up(pl.cdiv(B, n_tiles), 8)
    grid_len = pl.cdiv(B, TB)
    B_pad = grid_len * TB
    if B_pad != B:
        flat = jnp.pad(flat, ((0, B_pad - B), (0, 0)))

    out_pad = LANE  # final layer padded from 5 -> 128 lanes (lane-dense store)

    kernel_inputs = [flat]
    in_specs = [pl.BlockSpec((TB, IN_DIM), lambda i: (i, 0))]
    for (wt, bp) in prepped_params:
        kernel_inputs.append(wt)
        in_specs.append(pl.BlockSpec(wt.shape, lambda i: (0, 0)))  # VMEM-resident
        kernel_inputs.append(bp)
        in_specs.append(pl.BlockSpec(bp.shape, lambda i: (0, 0)))  # VMEM-resident

    # Honest (padded) cost estimate: streamed input read + bf16 padded output
    # write + one-time weight/bias read.
    param_bytes = sum(w.size * w.dtype.itemsize + b.size * b.dtype.itemsize
                      for (w, b) in prepped_params)
    bytes_accessed = B_pad * IN_DIM * 4 + B_pad * out_pad * 2 + param_bytes
    padded_dims = [(IN_DIM, LANE)] + [(LANE, LANE)] * (len(LAYER_DIMS) - 1)
    flops = 2 * B_pad * sum(fi * fo for fi, fo in padded_dims)
    transcendentals = B_pad * LANE * (len(LAYER_DIMS) - 1)

    out = pl.pallas_call(
        functools.partial(mlp_kernel, bf16_act=bf16_act),
        out_shape=jax.ShapeDtypeStruct((B_pad, out_pad), jnp.bfloat16),
        grid=(grid_len,),
        in_specs=in_specs,
        out_specs=pl.BlockSpec((TB, out_pad), lambda i: (i, 0)),
        compiler_params=pltpu.CompilerParams(
            dimension_semantics=("parallel",),
            # Covers TB=4096 on v5e (16 MiB scoped default) while leaving
            # headroom on v7x's 64 MiB physical VMEM.
            vmem_limit_bytes=48 * 1024 * 1024),
        cost_estimate=pl.CostEstimate(
            flops=flops,
            transcendentals=transcendentals,
            bytes_accessed=bytes_accessed),
    )(*kernel_inputs)

    # TODO(synk): if the consumer tolerates it, return the padded bf16 array and
    # fuse this slice into the consumer to drop the extra read/write pass.
    return out[:B, :OUT_FEATURES].astype(jnp.float32)


def init_params(key):
    """PyTorch-style Linear init: U(-1/sqrt(fan_in), 1/sqrt(fan_in))."""
    params = []
    for (fan_in, fan_out) in LAYER_DIMS:
        key, kw, kb = jax.random.split(key, 3)
        bound = 1.0 / jnp.sqrt(jnp.float32(fan_in))
        w = jax.random.uniform(kw, (fan_out, fan_in), jnp.float32, -bound, bound)
        b = jax.random.uniform(kb, (fan_out,), jnp.float32, -bound, bound)
        params.append((w, b))
    return params


def reference_forward(x, params):
    """Plain-JAX f32 reference matching torch semantics."""
    h = x.reshape(x.shape[0], -1)
    for i, (w, b) in enumerate(params):
        h = h @ w.T + b
        if i < len(params) - 1:
            h = jax.nn.sigmoid(h)
    return h


if __name__ == "__main__":
    key = jax.random.PRNGKey(0)
    key, kx = jax.random.split(key)

    # Small deterministic input: batch=8, 68 facial landmarks * 2 coords = 136.
    x = jax.random.normal(kx, (8, 68, 2), dtype=jnp.float32)
    params = init_params(key)

    prepped = prepare_params(params)  # one-time prep, off the hot path
    out = neural_net_forward(x, prepped)
    out = jax.block_until_ready(out)

    ref = reference_forward(x, params)
    assert out.shape == (8, 5)
    # bf16 MXU inputs / bf16 activations & output store (f32 accumulation)
    # -> looser tolerance vs the pure-f32 reference.
    assert jnp.allclose(out, ref, atol=3e-2, rtol=3e-2), "mismatch vs reference"

    print("KERNEL_OK")
</pallas_src>

<mosaic_0001>
module attributes {stable_mosaic.version = 11 : i64} {
  func.func @mlp_kernel(%arg0: i32, %arg1: memref<8x136xf32, #tpu.memory_space<vmem>>, %arg2: memref<136x128xbf16, #tpu.memory_space<vmem>>, %arg3: memref<1x128xf32, #tpu.memory_space<vmem>>, %arg4: memref<128x128xbf16, #tpu.memory_space<vmem>>, %arg5: memref<1x128xf32, #tpu.memory_space<vmem>>, %arg6: memref<128x128xbf16, #tpu.memory_space<vmem>>, %arg7: memref<1x128xf32, #tpu.memory_space<vmem>>, %arg8: memref<128x128xbf16, #tpu.memory_space<vmem>>, %arg9: memref<1x128xf32, #tpu.memory_space<vmem>>, %arg10: memref<128x128xbf16, #tpu.memory_space<vmem>>, %arg11: memref<1x128xf32, #tpu.memory_space<vmem>>, %arg12: memref<8x128xbf16, #tpu.memory_space<vmem>>) attributes {dimension_semantics = [#tpu.dimension_semantics<parallel>], iteration_bounds = array<i64: 1>, scalar_prefetch = 0 : i64, scratch_operands = 0 : i64, tpu.core_type = #tpu.core_type<tc>, window_params = [{transform_indices = @transform_0, window_bounds = array<i64: 8, 136>}, {pipeline_mode = #tpu.pipeline_mode<synchronous>, transform_indices = @transform_1, window_bounds = array<i64: 136, 128>}, {pipeline_mode = #tpu.pipeline_mode<synchronous>, transform_indices = @transform_2, window_bounds = array<i64: 1, 128>}, {pipeline_mode = #tpu.pipeline_mode<synchronous>, transform_indices = @transform_3, window_bounds = array<i64: 128, 128>}, {pipeline_mode = #tpu.pipeline_mode<synchronous>, transform_indices = @transform_4, window_bounds = array<i64: 1, 128>}, {pipeline_mode = #tpu.pipeline_mode<synchronous>, transform_indices = @transform_5, window_bounds = array<i64: 128, 128>}, {pipeline_mode = #tpu.pipeline_mode<synchronous>, transform_indices = @transform_6, window_bounds = array<i64: 1, 128>}, {pipeline_mode = #tpu.pipeline_mode<synchronous>, transform_indices = @transform_7, window_bounds = array<i64: 128, 128>}, {pipeline_mode = #tpu.pipeline_mode<synchronous>, transform_indices = @transform_8, window_bounds = array<i64: 1, 128>}, {pipeline_mode = #tpu.pipeline_mode<synchronous>, transform_indices = @transform_9, window_bounds = array<i64: 128, 128>}, {pipeline_mode = #tpu.pipeline_mode<synchronous>, transform_indices = @transform_10, window_bounds = array<i64: 1, 128>}, {transform_indices = @transform_11, window_bounds = array<i64: 8, 128>}]} {
    %c0 = arith.constant 0 : index
    %c0_0 = arith.constant 0 : index
    %0 = vector.load %arg1[%c0, %c0_0] : memref<8x136xf32, #tpu.memory_space<vmem>>, vector<8x136xf32>
    %1 = arith.truncf %0 : vector<8x136xf32> to vector<8x136xbf16>
    %c0_1 = arith.constant 0 : index
    %c0_2 = arith.constant 0 : index
    %2 = vector.load %arg2[%c0_1, %c0_2] : memref<136x128xbf16, #tpu.memory_space<vmem>>, vector<136x128xbf16>
    %cst = arith.constant dense<0.000000e+00> : vector<8x128xf32>
    %3 = tpu.matmul %1, %2, %cst {dimension_numbers = #tpu.dot_dimension_numbers<[1], [0], [0], [1], [0, 0, 1, 1], [], []>} : vector<8x136xbf16>, vector<136x128xbf16>, vector<8x128xf32> -> vector<8x128xf32>
    %c0_3 = arith.constant 0 : index
    %c0_4 = arith.constant 0 : index
    %4 = vector.load %arg3[%c0_3, %c0_4] : memref<1x128xf32, #tpu.memory_space<vmem>>, vector<1x128xf32>
    %5 = vector.broadcast %4 : vector<1x128xf32> to vector<8x128xf32>
    %6 = arith.addf %3, %5 : vector<8x128xf32>
    %cst_5 = arith.constant 5.000000e-01 : f32
    %7 = vector.broadcast %cst_5 : f32 to vector<8x128xf32>
    %8 = arith.mulf %6, %7 : vector<8x128xf32>
    %9 = math.tanh %8 : vector<8x128xf32>
    %cst_6 = arith.constant 5.000000e-01 : f32
    %10 = vector.broadcast %cst_6 : f32 to vector<8x128xf32>
    %11 = arith.mulf %9, %10 : vector<8x128xf32>
    %cst_7 = arith.constant 5.000000e-01 : f32
    %12 = vector.broadcast %cst_7 : f32 to vector<8x128xf32>
    %13 = arith.addf %11, %12 : vector<8x128xf32>
    %14 = arith.truncf %13 : vector<8x128xf32> to vector<8x128xbf16>
    %c0_8 = arith.constant 0 : index
    %c0_9 = arith.constant 0 : index
    %15 = vector.load %arg4[%c0_8, %c0_9] : memref<128x128xbf16, #tpu.memory_space<vmem>>, vector<128x128xbf16>
    %cst_10 = arith.constant dense<0.000000e+00> : vector<8x128xf32>
    %16 = tpu.matmul %14, %15, %cst_10 {dimension_numbers = #tpu.dot_dimension_numbers<[1], [0], [0], [1], [0, 0, 1, 1], [], []>} : vector<8x128xbf16>, vector<128x128xbf16>, vector<8x128xf32> -> vector<8x128xf32>
    %c0_11 = arith.constant 0 : index
    %c0_12 = arith.constant 0 : index
    %17 = vector.load %arg5[%c0_11, %c0_12] : memref<1x128xf32, #tpu.memory_space<vmem>>, vector<1x128xf32>
    %18 = vector.broadcast %17 : vector<1x128xf32> to vector<8x128xf32>
    %19 = arith.addf %16, %18 : vector<8x128xf32>
    %cst_13 = arith.constant 5.000000e-01 : f32
    %20 = vector.broadcast %cst_13 : f32 to vector<8x128xf32>
    %21 = arith.mulf %19, %20 : vector<8x128xf32>
    %22 = math.tanh %21 : vector<8x128xf32>
    %cst_14 = arith.constant 5.000000e-01 : f32
    %23 = vector.broadcast %cst_14 : f32 to vector<8x128xf32>
    %24 = arith.mulf %22, %23 : vector<8x128xf32>
    %cst_15 = arith.constant 5.000000e-01 : f32
    %25 = vector.broadcast %cst_15 : f32 to vector<8x128xf32>
    %26 = arith.addf %24, %25 : vector<8x128xf32>
    %27 = arith.truncf %26 : vector<8x128xf32> to vector<8x128xbf16>
    %c0_16 = arith.constant 0 : index
    %c0_17 = arith.constant 0 : index
    %28 = vector.load %arg6[%c0_16, %c0_17] : memref<128x128xbf16, #tpu.memory_space<vmem>>, vector<128x128xbf16>
    %cst_18 = arith.constant dense<0.000000e+00> : vector<8x128xf32>
    %29 = tpu.matmul %27, %28, %cst_18 {dimension_numbers = #tpu.dot_dimension_numbers<[1], [0], [0], [1], [0, 0, 1, 1], [], []>} : vector<8x128xbf16>, vector<128x128xbf16>, vector<8x128xf32> -> vector<8x128xf32>
    %c0_19 = arith.constant 0 : index
    %c0_20 = arith.constant 0 : index
    %30 = vector.load %arg7[%c0_19, %c0_20] : memref<1x128xf32, #tpu.memory_space<vmem>>, vector<1x128xf32>
    %31 = vector.broadcast %30 : vector<1x128xf32> to vector<8x128xf32>
    %32 = arith.addf %29, %31 : vector<8x128xf32>
    %cst_21 = arith.constant 5.000000e-01 : f32
    %33 = vector.broadcast %cst_21 : f32 to vector<8x128xf32>
    %34 = arith.mulf %32, %33 : vector<8x128xf32>
    %35 = math.tanh %34 : vector<8x128xf32>
    %cst_22 = arith.constant 5.000000e-01 : f32
    %36 = vector.broadcast %cst_22 : f32 to vector<8x128xf32>
    %37 = arith.mulf %35, %36 : vector<8x128xf32>
    %cst_23 = arith.constant 5.000000e-01 : f32
    %38 = vector.broadcast %cst_23 : f32 to vector<8x128xf32>
    %39 = arith.addf %37, %38 : vector<8x128xf32>
    %40 = arith.truncf %39 : vector<8x128xf32> to vector<8x128xbf16>
    %c0_24 = arith.constant 0 : index
    %c0_25 = arith.constant 0 : index
    %41 = vector.load %arg8[%c0_24, %c0_25] : memref<128x128xbf16, #tpu.memory_space<vmem>>, vector<128x128xbf16>
    %cst_26 = arith.constant dense<0.000000e+00> : vector<8x128xf32>
    %42 = tpu.matmul %40, %41, %cst_26 {dimension_numbers = #tpu.dot_dimension_numbers<[1], [0], [0], [1], [0, 0, 1, 1], [], []>} : vector<8x128xbf16>, vector<128x128xbf16>, vector<8x128xf32> -> vector<8x128xf32>
    %c0_27 = arith.constant 0 : index
    %c0_28 = arith.constant 0 : index
    %43 = vector.load %arg9[%c0_27, %c0_28] : memref<1x128xf32, #tpu.memory_space<vmem>>, vector<1x128xf32>
    %44 = vector.broadcast %43 : vector<1x128xf32> to vector<8x128xf32>
    %45 = arith.addf %42, %44 : vector<8x128xf32>
    %cst_29 = arith.constant 5.000000e-01 : f32
    %46 = vector.broadcast %cst_29 : f32 to vector<8x128xf32>
    %47 = arith.mulf %45, %46 : vector<8x128xf32>
    %48 = math.tanh %47 : vector<8x128xf32>
    %cst_30 = arith.constant 5.000000e-01 : f32
    %49 = vector.broadcast %cst_30 : f32 to vector<8x128xf32>
    %50 = arith.mulf %48, %49 : vector<8x128xf32>
    %cst_31 = arith.constant 5.000000e-01 : f32
    %51 = vector.broadcast %cst_31 : f32 to vector<8x128xf32>
    %52 = arith.addf %50, %51 : vector<8x128xf32>
    %53 = arith.truncf %52 : vector<8x128xf32> to vector<8x128xbf16>
    %c0_32 = arith.constant 0 : index
    %c0_33 = arith.constant 0 : index
    %54 = vector.load %arg10[%c0_32, %c0_33] : memref<128x128xbf16, #tpu.memory_space<vmem>>, vector<128x128xbf16>
    %cst_34 = arith.constant dense<0.000000e+00> : vector<8x128xf32>
    %55 = tpu.matmul %53, %54, %cst_34 {dimension_numbers = #tpu.dot_dimension_numbers<[1], [0], [0], [1], [0, 0, 1, 1], [], []>} : vector<8x128xbf16>, vector<128x128xbf16>, vector<8x128xf32> -> vector<8x128xf32>
    %c0_35 = arith.constant 0 : index
    %c0_36 = arith.constant 0 : index
    %56 = vector.load %arg11[%c0_35, %c0_36] : memref<1x128xf32, #tpu.memory_space<vmem>>, vector<1x128xf32>
    %57 = vector.broadcast %56 : vector<1x128xf32> to vector<8x128xf32>
    %58 = arith.addf %55, %57 : vector<8x128xf32>
    %59 = arith.truncf %58 : vector<8x128xf32> to vector<8x128xbf16>
    %c0_37 = arith.constant 0 : index
    %c0_38 = arith.constant 0 : index
    %60 = vector.load %arg12[%c0_37, %c0_38] : memref<8x128xbf16, #tpu.memory_space<vmem>>, vector<8x128xbf16>
    tpu.vector_store %arg12[%c0_37, %c0_38], %59 {strides = array<i32>} : memref<8x128xbf16, #tpu.memory_space<vmem>>, vector<8x128xbf16>,
    return
  }
  func.func @transform_0(%arg0: i32) -> (i32, i32) {
    %c0_i32 = arith.constant 0 : i32
    %c0_i32_0 = arith.constant 0 : i32
    return %arg0, %c0_i32 : i32, i32
  }
  func.func @transform_1(%arg0: i32) -> (i32, i32) {
    %c0_i32 = arith.constant 0 : i32
    %c0_i32_0 = arith.constant 0 : i32
    %c0_i32_1 = arith.constant 0 : i32
    return %c0_i32, %c0_i32_0 : i32, i32
  }
  func.func @transform_2(%arg0: i32) -> (i32, i32) {
    %c0_i32 = arith.constant 0 : i32
    %c0_i32_0 = arith.constant 0 : i32
    %c0_i32_1 = arith.constant 0 : i32
    return %c0_i32, %c0_i32_0 : i32, i32
  }
  func.func @transform_3(%arg0: i32) -> (i32, i32) {
    %c0_i32 = arith.constant 0 : i32
    %c0_i32_0 = arith.constant 0 : i32
    %c0_i32_1 = arith.constant 0 : i32
    return %c0_i32, %c0_i32_0 : i32, i32
  }
  func.func @transform_4(%arg0: i32) -> (i32, i32) {
    %c0_i32 = arith.constant 0 : i32
    %c0_i32_0 = arith.constant 0 : i32
    %c0_i32_1 = arith.constant 0 : i32
    return %c0_i32, %c0_i32_0 : i32, i32
  }
  func.func @transform_5(%arg0: i32) -> (i32, i32) {
    %c0_i32 = arith.constant 0 : i32
    %c0_i32_0 = arith.constant 0 : i32
    %c0_i32_1 = arith.constant 0 : i32
    return %c0_i32, %c0_i32_0 : i32, i32
  }
  func.func @transform_6(%arg0: i32) -> (i32, i32) {
    %c0_i32 = arith.constant 0 : i32
    %c0_i32_0 = arith.constant 0 : i32
    %c0_i32_1 = arith.constant 0 : i32
    return %c0_i32, %c0_i32_0 : i32, i32
  }
  func.func @transform_7(%arg0: i32) -> (i32, i32) {
    %c0_i32 = arith.constant 0 : i32
    %c0_i32_0 = arith.constant 0 : i32
    %c0_i32_1 = arith.constant 0 : i32
    return %c0_i32, %c0_i32_0 : i32, i32
  }
  func.func @transform_8(%arg0: i32) -> (i32, i32) {
    %c0_i32 = arith.constant 0 : i32
    %c0_i32_0 = arith.constant 0 : i32
    %c0_i32_1 = arith.constant 0 : i32
    return %c0_i32, %c0_i32_0 : i32, i32
  }
  func.func @transform_9(%arg0: i32) -> (i32, i32) {
    %c0_i32 = arith.constant 0 : i32
    %c0_i32_0 = arith.constant 0 : i32
    %c0_i32_1 = arith.constant 0 : i32
    return %c0_i32, %c0_i32_0 : i32, i32
  }
  func.func @transform_10(%arg0: i32) -> (i32, i32) {
    %c0_i32 = arith.constant 0 : i32
    %c0_i32_0 = arith.constant 0 : i32
    %c0_i32_1 = arith.constant 0 : i32
    return %c0_i32, %c0_i32_0 : i32, i32
  }
  func.func @transform_11(%arg0: i32) -> (i32, i32) {
    %c0_i32 = arith.constant 0 : i32
    %c0_i32_0 = arith.constant 0 : i32
    return %arg0, %c0_i32 : i32, i32
  }
}

</mosaic_0001>

<bundles_post_ra>
// kernel: tpu_custom_call.1
= control target key start
LH: loop header
LB: loop body
LE: loop exit
PB: predicated region body
PF: predicated region fallthrough
CT: control target
= control target key end

     0   :  { %16 = vsyncpa [#allocation3], 0  ;;  %s1345_s0 = inlined_call_operand.hbm [shape: f32[8,136], index: 0, kind: input, shape index: {}]   ;;  %s1346_s1 = inlined_call_operand.hbm [shape: bf16[136,128], index: 1, kind: input, shape index: {}]   ;;  %s1347_s2 = inlined_call_operand.vmem [shape: f32[1,128], index: 2, kind: input, shape index: {}]   ;;  %s1348_s3 = inlined_call_operand.hbm [shape: bf16[128,128], index: 3, kind: input, shape index: {}]   ;;  %s1349_s4 = inlined_call_operand.vmem [shape: f32[1,128], index: 4, kind: input, shape index: {}]   ;;  %s1350_s5 = inlined_call_operand.hbm [shape: bf16[128,128], index: 5, kind: input, shape index: {}]   ;;  %s1351_s6 = inlined_call_operand.vmem [shape: f32[1,128], index: 6, kind: input, shape index: {}]   ;;  %s1352_s7 = inlined_call_operand.hbm [shape: bf16[128,128], index: 7, kind: input, shape index: {}]   ;;  %s1353_s8 = inlined_call_operand.vmem [shape: f32[1,128], index: 8, kind: input, shape index: {}]   ;;  %s1354_s9 = inlined_call_operand.hbm [shape: bf16[128,128], index: 9, kind: input, shape index: {}]   ;;  %s1355_s10 = inlined_call_operand.vmem [shape: f32[1,128], index: 10, kind: input, shape index: {}]   ;;  %s1356_s11 = inlined_call_operand.hbm [shape: bf16[8,128], index: 11, kind: output, shape index: {}]  }
   0x1   :  { %17 = vsyncpa [#allocation6], 0 }
   0x2   :  { %18 = vsyncpa [#allocation9], 0 }
   0x3   :  { %19 = vsyncpa [#allocation12], 0 }
   0x4   :  { %20 = vsyncpa [#allocation4], 0  ;;  %s1119_s17 = smov [#allocation5]   ;;  %s955_s21 = scalar_lea.hbm %s1346_s1, 1088 }
   0x5   :  { %s36_s18 = sshll.u32 %s1119_s17, 4  ;;  %p956_p0 = scmp.ne.s32.totalorder %s1346_s1, %s955_s21  ;;  %s37_s18 = int_to_ptr.vmem [resolvable:$true] %s36_s18 }
   0x6   :  { %p959_p1 = scmp.lt.u32.totalorder %s955_s21, %s1346_s1 }
   0x8   :  { %p961_p2 = pnand %p959_p1, %p956_p0 }
   0xa   :  { %964 = shalt.err (!%p961_p2)
}
   0xb   :  { %s965_s26 = scalar_lea.vmem %s37_s18, 1088  ;;  %p970_p4 = scmp.lt.s32.totalorder %s37_s18, %s37_s18 }
   0xc   :  { %p966_p3 = scmp.ne.s32.totalorder %s37_s18, %s965_s26  ;;  %p971_p5 = scmp.lt.s32.totalorder %s965_s26, %s965_s26 }
   0xe   :  { %p972_p6 = por %p971_p5, %p970_p4 }
  0x10   :  { %p973_p7 = pnand %p972_p6, %p966_p3 }
  0x12   :  { %976 = shalt.err (!%p973_p7)
}
  0x13   :  { %s1120_s27 = smov 64   ;;  %s1121_s28 = smov 4  }
  0x14   :  { %42 = dma.hbm_to_vmem [thread:$0]  %s1346_s1, 1088, %s37_s18, [#allocation6], %s1120_s27, %s1120_s27, %s1121_s28  }
  0x15   :  { %s1122_s12 = smov [#allocation8]   ;;  %s1123_s14 = smov [#allocation2]  }
  0x16   :  { %s64_s13 = sshll.u32 %s1122_s12, 4  ;;  %s27_s15 = sshll.u32 %s1123_s14, 4  ;;  %s65_s13 = int_to_ptr.vmem [resolvable:$true] %s64_s13  ;;  %s28_s15 = int_to_ptr.vmem [resolvable:$true] %s27_s15 }
  0x17   :  { %s977_s19 = scalar_lea.hbm %s1350_s5, 1024 }
  0x18   :  { %p978_p8 = scmp.ne.s32.totalorder %s1350_s5, %s977_s19  ;;  %p981_p9 = scmp.lt.u32.totalorder %s977_s19, %s1350_s5 }
  0x1a   :  { %p983_p10 = pnand %p981_p9, %p978_p8 }
  0x1c   :  { %986 = shalt.err (!%p983_p10)
}
  0x1d   :  { %s987_s1 = scalar_lea.vmem %s65_s13, 1024  ;;  %p992_p12 = scmp.lt.s32.totalorder %s65_s13, %s65_s13 }
  0x1e   :  { %p988_p11 = scmp.ne.s32.totalorder %s65_s13, %s987_s1  ;;  %p993_p13 = scmp.lt.s32.totalorder %s987_s1, %s987_s1 }
  0x20   :  { %p994_p0 = por %p993_p13, %p992_p12 }
  0x22   :  { %p995_p1 = pnand %p994_p0, %p988_p11 }
  0x24   :  { %998 = shalt.err (!%p995_p1)
}
  0x25   :  { %70 = dma.hbm_to_vmem [thread:$0]  %s1350_s5, 1024, %s65_s13, [#allocation9], %s1120_s27, %s1120_s27, %s1121_s28  }
  0x26   :  { %s999_s29 = scalar_lea.hbm %s1345_s0, 256 }
  0x27   :  { %p1000_p2 = scmp.ne.s32.totalorder %s1345_s0, %s999_s29  ;;  %p1003_p3 = scmp.lt.u32.totalorder %s999_s29, %s1345_s0 }
  0x29   :  { %p1005_p4 = pnand %p1003_p3, %p1000_p2 }
  0x2b   :  { %1008 = shalt.err (!%p1005_p4)
}
  0x2c   :  { %s1009_s17 = scalar_lea.vmem %s28_s15, 256  ;;  %p1014_p6 = scmp.lt.s32.totalorder %s28_s15, %s28_s15 }
  0x2d   :  { %p1010_p5 = scmp.ne.s32.totalorder %s28_s15, %s1009_s17  ;;  %p1015_p7 = scmp.lt.s32.totalorder %s1009_s17, %s1009_s17 }
  0x2f   :  { %p1016_p8 = por %p1015_p7, %p1014_p6 }
  0x31   :  { %p1017_p9 = pnand %p1016_p8, %p1010_p5 }
  0x33   :  { %1020 = shalt.err (!%p1017_p9)
}
  0x34   :  { %30 = dma.hbm_to_vmem [thread:$0]  %s1345_s0, 256, %s28_s15, [#allocation3]  }
  0x35   :  { %s1124_s19 = smov [#allocation7]   ;;  %s1125_s21 = smov [#allocation10]  }
  0x36   :  { %s50_s20 = sshll.u32 %s1124_s19, 4  ;;  %s78_s22 = sshll.u32 %s1125_s21, 4  ;;  %s51_s20 = int_to_ptr.vmem [resolvable:$true] %s50_s20  ;;  %s79_s22 = int_to_ptr.vmem [resolvable:$true] %s78_s22 }
  0x37   :  { %s1021_s18 = scalar_lea.hbm %s1348_s3, 1024 }
  0x38   :  { %p1022_p10 = scmp.ne.s32.totalorder %s1348_s3, %s1021_s18  ;;  %p1025_p11 = scmp.lt.u32.totalorder %s1021_s18, %s1348_s3 }
  0x3a   :  { %p1027_p12 = pnand %p1025_p11, %p1022_p10 }
  0x3c   :  { %1030 = shalt.err (!%p1027_p12)
}
  0x3d   :  { %s1031_s0 = scalar_lea.vmem %s51_s20, 1024  ;;  %p1036_p0 = scmp.lt.s32.totalorder %s51_s20, %s51_s20 }
  0x3e   :  { %p1032_p13 = scmp.ne.s32.totalorder %s51_s20, %s1031_s0  ;;  %p1037_p1 = scmp.lt.s32.totalorder %s1031_s0, %s1031_s0 }
  0x40   :  { %p1038_p2 = por %p1037_p1, %p1036_p0 }
  0x42   :  { %p1039_p3 = pnand %p1038_p2, %p1032_p13 }
  0x44   :  { %1042 = shalt.err (!%p1039_p3)
}
  0x45   :  { %56 = dma.hbm_to_vmem [thread:$0]  %s1348_s3, 1024, %s51_s20, [#allocation6], %s1120_s27, %s1120_s27, %s1121_s28  }
  0x46   :  { %s1043_s16 = scalar_lea.hbm %s1352_s7, 1024 }
  0x47   :  { %p1044_p4 = scmp.ne.s32.totalorder %s1352_s7, %s1043_s16  ;;  %p1047_p5 = scmp.lt.u32.totalorder %s1043_s16, %s1352_s7 }
  0x49   :  { %p1049_p6 = pnand %p1047_p5, %p1044_p4 }
  0x4b   :  { %1052 = shalt.err (!%p1049_p6)
}
  0x4c   :  { %s1053_s21 = scalar_lea.vmem %s79_s22, 1024  ;;  %p1058_p8 = scmp.lt.s32.totalorder %s79_s22, %s79_s22 }
  0x4d   :  { %p1054_p7 = scmp.ne.s32.totalorder %s79_s22, %s1053_s21  ;;  %p1059_p9 = scmp.lt.s32.totalorder %s1053_s21, %s1053_s21 }
  0x4f   :  { %p1060_p10 = por %p1059_p9, %p1058_p8 }
  0x51   :  { %p1061_p11 = pnand %p1060_p10, %p1054_p7 }
  0x53   :  { %1064 = shalt.err (!%p1061_p11)
}
  0x54   :  { %84 = dma.hbm_to_vmem [thread:$0]  %s1352_s7, 1024, %s79_s22, [#allocation9], %s1120_s27, %s1120_s27, %s1121_s28  }
  0x55   :  { %s1126_s23 = smov [#allocation11]   ;;  %s1065_s25 = scalar_lea.hbm %s1354_s9, 1024 }
  0x56   :  { %s92_s1 = sshll.u32 %s1126_s23, 4  ;;  %p1066_p12 = scmp.ne.s32.totalorder %s1354_s9, %s1065_s25  ;;  %s93_s1 = int_to_ptr.vmem [resolvable:$true] %s92_s1 }
  0x57   :  { %p1069_p13 = scmp.lt.u32.totalorder %s1065_s25, %s1354_s9 }
  0x59   :  { %p1071_p0 = pnand %p1069_p13, %p1066_p12 }
  0x5b   :  { %1074 = shalt.err (!%p1071_p0)
}
  0x5c   :  { %s1075_s30 = scalar_lea.vmem %s93_s1, 1024  ;;  %p1080_p2 = scmp.lt.s32.totalorder %s93_s1, %s93_s1 }
  0x5d   :  { %p1076_p1 = scmp.ne.s32.totalorder %s93_s1, %s1075_s30  ;;  %p1081_p3 = scmp.lt.s32.totalorder %s1075_s30, %s1075_s30 }
  0x5f   :  { %p1082_p4 = por %p1081_p3, %p1080_p2 }
  0x61   :  { %p1083_p5 = pnand %p1082_p4, %p1076_p1 }
  0x63   :  { %1086 = shalt.err (!%p1083_p5)
}
  0x64   :  { %98 = dma.hbm_to_vmem [thread:$0]  %s1354_s9, 1024, %s93_s1, [#allocation12], %s1120_s27, %s1120_s27, %s1121_s28  }
  0x65   :  { %1109 = dma.done.wait [#allocation3], 256  }
  0x66   :  { %1110 = vsyncadd [#allocation3], 4294967040 }
  0x67   :  { %1111 = dma.done.wait [#allocation6], 2112  }
  0x68   :  { %1112 = vsyncadd [#allocation6], 4294965184 }
  0x69   :  { %1113 = dma.done.wait [#allocation9], 2048  }
  0x6a   :  { %1114 = vsyncadd [#allocation9], 4294965248 }
  0x6b   :  { %1115 = dma.done.wait [#allocation12], 1024  }
  0x6c   :  { %1116 = vsyncadd [#allocation12], 4294966272  ;;  %v1127_v0 = vmov 0   ;;  %v1128_v1 = vmov 0.0   ;;  %v906_v2 = vld [vmem:[#allocation5] sm:$0xff]   ;;  %v907_v3 = vld [vmem:[#allocation5 + $0x8] sm:$0xff]  }
  0x6d   :  { %207 = vmatprep.subr.bf16.mxu0 %v1127_v0  ;;  %814 = vmatprep.subr.bf16.mxu1 %v1128_v1  ;;  %v908_v4 = vld [vmem:[#allocation5 + $0x10] sm:$0xff]   ;;  %v914_v5 = vld [vmem:[#allocation5 + $0x40] ss:$0 sps:$4 sm:$0xff]   ;;  %v121_v6 = vld [vmem:[#allocation2 + $0x8] sm:$0xff]  ;;  %vm199_vm0 = vcmask 64512   ;;  %vm203_vm1 = vcmask 1043456  }
  0x6e   :  { %208 = vmatpush1.bf16.msra.mxu0 %v906_v2  ;;  %v909_v7 = vld [vmem:[#allocation5 + $0x18] sm:$0xff]   ;;  %v123_v8 = vpack.c.bf16 %v121_v6, %v121_v6  ;;  %v915_v9 = vld [vmem:[#allocation7] sm:$0xff]   ;;  %v205_v11 = vsel %vm203_vm1, %v914_v5, 0  ;;  %v916_v12 = vld [vmem:[#allocation7 + $0x8] sm:$0xff]   ;;  %vm1129_vm2 = vmmov 0   ;;  %s1130_s5 = smov [#allocation13]  }
  0x6f   :  { %209 = vmatprep.subr.bf16.mxu0 %v1127_v0  ;;  %v910_v10 = vld [vmem:[#allocation5 + $0x20] sm:$0xff]   ;;  %815 = vmatpush3.bf16.msra.mxu1 %v915_v9  ;;  %v917_v13 = vld [vmem:[#allocation7 + $0x10] sm:$0xff]   ;;  %v911_v14 = vld [vmem:[#allocation5 + $0x28] sm:$0xff]   ;;  %s719_s13 = sshll.u32 %s1130_s5, 4  ;;  %s720_s13 = int_to_ptr.vmem [resolvable:$true] %s719_s13 }
  0x70   :  { %741 = vmatprep.mubr.msk.bf16.mxu0 %vm199_vm0, %v123_v8  ;;  %816 = vmatprep.subr.bf16.mxu1 %v1128_v1  ;;  %v912_v15 = vld [vmem:[#allocation5 + $0x30] sm:$0xff]   ;;  %v913_v16 = vld [vmem:[#allocation5 + $0x38] sm:$0xff]   ;;  %v919_v20 = vld [vmem:[#allocation7 + $0x20] sm:$0xff]   ;;  %p1092_p7 = scmp.lt.s32.totalorder %s720_s13, %s720_s13 }
  0x71   :  { %v120_v17 = vld [vmem:[#allocation2] sm:$0xff]  ;;  %v918_v19 = vld [vmem:[#allocation7 + $0x18] sm:$0xff]   ;;  %830 = vmatprep.mubr.msk.bf16.mxu1 %vm1129_vm2, %v1128_v1  ;;  %v923_v34 = vld [vmem:[#allocation8] sm:$0xff]  }
  0x72   :  { %210 = vmatpush1.bf16.msra.mxu0 %v907_v3  ;;  %v122_v18 = vpack.c.bf16 %v120_v17, %v120_v17  ;;  %v920_v21 = vld [vmem:[#allocation7 + $0x28] sm:$0xff]   ;;  %v921_v22 = vld [vmem:[#allocation7 + $0x30] sm:$0xff]   ;;  %v922_v23 = vld [vmem:[#allocation7 + $0x38] sm:$0xff]  }
  0x73   :  { %211 = vmatprep.subr.bf16.mxu0 %v1127_v0  ;;  %817 = vmatpush3.bf16.msra.mxu1 %v916_v12  ;;  %v731_v24 = vld [vmem:[%s1347_s2] ss:$0 sm:$0xff]  ;;  %v925_v37 = vld [vmem:[#allocation8 + $0x10] sm:$0xff]   ;;  %v926_v38 = vld [vmem:[#allocation8 + $0x18] sm:$0xff]  }
  0x74   :  { %818 = vmatprep.subr.bf16.mxu1 %v1128_v1  ;;  %v924_v36 = vld [vmem:[#allocation8 + $0x8] sm:$0xff]   ;;  %v927_v39 = vld [vmem:[#allocation8 + $0x20] sm:$0xff]   ;;  %v929_v41 = vld [vmem:[#allocation8 + $0x30] sm:$0xff]  }
  0x75   :  { %v928_v40 = vld [vmem:[#allocation8 + $0x28] sm:$0xff]   ;;  %v930_v42 = vld [vmem:[#allocation8 + $0x38] sm:$0xff]   ;;  %v931_v43 = vld [vmem:[#allocation10] sm:$0xff]  }
  0x76   :  { %212 = vmatpush1.bf16.msra.mxu0 %v908_v4  ;;  %v932_v44 = vld [vmem:[#allocation10 + $0x8] sm:$0xff]   ;;  %v933_v45 = vld [vmem:[#allocation10 + $0x10] sm:$0xff]   ;;  %v934_v57 = vld [vmem:[#allocation10 + $0x18] sm:$0xff]  }
  0x77   :  { %213 = vmatprep.subr.bf16.mxu0 %v1127_v0  ;;  %819 = vmatpush3.bf16.msra.mxu1 %v917_v13  ;;  %v742_v46 = vld [vmem:[%s1349_s4] ss:$0 sm:$0xff]  ;;  %v935_v58 = vld [vmem:[#allocation10 + $0x20] sm:$0xff]   ;;  %v937_v60 = vld [vmem:[#allocation10 + $0x30] sm:$0xff]  }
  0x78   :  { %820 = vmatprep.subr.bf16.mxu1 %v1128_v1  ;;  %v936_v59 = vld [vmem:[#allocation10 + $0x28] sm:$0xff]   ;;  %v938_v61 = vld [vmem:[#allocation10 + $0x38] sm:$0xff]   ;;  %v939_v62 = vld [vmem:[#allocation11] sm:$0xff]  }
  0x79   :  { %v940_v63 = vld [vmem:[#allocation11 + $0x8] sm:$0xff]   ;;  %v942_v13 = vld [vmem:[#allocation11 + $0x18] sm:$0xff]  }
  0x7a   :  { %214 = vmatpush1.bf16.msra.mxu0 %v909_v7  ;;  %v751_v2 = vld [vmem:[%s1351_s6] ss:$0 sm:$0xff]  ;;  %v946_v17 = vld [vmem:[#allocation11 + $0x38] sm:$0xff]  }
  0x7b   :  { %215 = vmatprep.subr.bf16.mxu0 %v1127_v0  ;;  %821 = vmatpush3.bf16.msra.mxu1 %v918_v19 }
  0x7c   :  { %822 = vmatprep.subr.bf16.mxu1 %v1128_v1 }
  0x7e   :  { %216 = vmatpush1.bf16.msra.mxu0 %v910_v10 }
  0x7f   :  { %217 = vmatprep.subr.bf16.mxu0 %v1127_v0  ;;  %823 = vmatpush3.bf16.msra.mxu1 %v919_v20 }
  0x80   :  { %824 = vmatprep.subr.bf16.mxu1 %v1128_v1 }
  0x82   :  { %218 = vmatpush1.bf16.msra.mxu0 %v911_v14  ;;  %v943_v14 = vld [vmem:[#allocation11 + $0x20] sm:$0xff]  }
  0x83   :  { %219 = vmatprep.subr.bf16.mxu0 %v1127_v0  ;;  %825 = vmatpush3.bf16.msra.mxu1 %v920_v21 }
  0x84   :  { %826 = vmatprep.subr.bf16.mxu1 %v1128_v1 }
  0x86   :  { %220 = vmatpush1.bf16.msra.mxu0 %v912_v15  ;;  %v944_v15 = vld [vmem:[#allocation11 + $0x28] sm:$0xff]  }
  0x87   :  { %221 = vmatprep.subr.bf16.mxu0 %v1127_v0  ;;  %827 = vmatpush3.bf16.msra.mxu1 %v921_v22 }
  0x88   :  { %828 = vmatprep.subr.bf16.mxu1 %v1128_v1 }
  0x8a   :  { %222 = vmatpush1.bf16.msra.mxu0 %v913_v16  ;;  %v945_v16 = vld [vmem:[#allocation11 + $0x30] sm:$0xff]  }
  0x8b   :  { %223 = vmatprep.subr.bf16.mxu0 %v1127_v0  ;;  %829 = vmatpush3.bf16.msra.mxu1 %v922_v23  ;;  %v941_v0 = vld [vmem:[#allocation11 + $0x10] sm:$0xff]  }
  0x8c   :  { %834 = vmatprep.subr.bf16.mxu1 %v1128_v1 }
  0x8e   :  { %224 = vmatpush1.bf16.msra.mxu0 %v205_v11 }
  0x8f   :  { %854 = vmatprep.subr.bf16.mxu0 %v1128_v1 }
  0x91   :  { %240 = vmatmul.mubr.bf16.vlgmr.msra.gmra.mrb[0].mxu0 %v122_v18  ;;  %v760_v18 = vld [vmem:[%s1353_s8] ss:$0 sm:$0xff]  ;;  %s1087_s8 = scalar_lea.vmem %s720_s13, 64 }
  0x92   :  { %870 = vmatprep.mubr.msk.bf16.mxu0 %vm1129_vm2, %v1128_v1  ;;  %855 = vmatpush3.bf16.msra.mxu0 %v931_v43  ;;  %p1088_p6 = scmp.ne.s32.totalorder %s720_s13, %s1087_s8  ;;  %p1093_p8 = scmp.lt.s32.totalorder %s1087_s8, %s1087_s8 }
  0x93   :  { %856 = vmatprep.subr.bf16.mxu0 %v1128_v1 }
  0x94   :  { %p1094_p9 = por %p1093_p8, %p1092_p7 }
  0x96   :  { %857 = vmatpush3.bf16.msra.mxu0 %v932_v44  ;;  %p1095_p10 = pnand %p1094_p9, %p1088_p6 }
  0x97   :  { %858 = vmatprep.subr.bf16.mxu0 %v1128_v1 }
  0x9a   :  { %859 = vmatpush3.bf16.msra.mxu0 %v933_v45 }
  0x9b   :  { %860 = vmatprep.subr.bf16.mxu0 %v1128_v1 }
  0x9e   :  { %861 = vmatpush3.bf16.msra.mxu0 %v934_v57 }
  0x9f   :  { %862 = vmatprep.subr.bf16.mxu0 %v1128_v1 }
  0xa2   :  { %863 = vmatpush3.bf16.msra.mxu0 %v935_v58 }
  0xa3   :  { %864 = vmatprep.subr.bf16.mxu0 %v1128_v1 }
  0xa6   :  { %865 = vmatpush3.bf16.msra.mxu0 %v936_v59 }
  0xa7   :  { %866 = vmatprep.subr.bf16.mxu0 %v1128_v1 }
  0xaa   :  { %867 = vmatpush3.bf16.msra.mxu0 %v937_v60 }
  0xab   :  { %868 = vmatprep.subr.bf16.mxu0 %v1128_v1 }
  0xae   :  { %869 = vmatpush3.bf16.msra.mxu0 %v938_v61 }
 0x164   :  { %v241_v25 = vpop.f32.mrb[0].mxu0 }
 0x165   :  { %v242_v26 = vadd.f32 %v731_v24, %v241_v25  ;;  %v243_v27 = vpop.f32.mrb[1].mxu0 }
 0x166   :  { %v244_v28 = vpop.f32.mrb[2].mxu0 }
 0x167   :  { %v247_v29 = vmul.f32 0.5, %v242_v26  ;;  %v245_v30 = vpop.f32.mrb[3].mxu0 }
 0x169   :  { %947 = vtanh.f32 %v247_v29 }
 0x173   :  { %v948_v31 = vpop.eup %947 }
 0x174   :  { %v249_v32 = vmul.f32 0.5, %v948_v31 }
 0x176   :  { %v250_v33 = vadd.f32 0.5, %v249_v32 }
 0x178   :  { %v251_v35 = vpack.c.bf16 %v250_v33, %v250_v33 }
 0x17a   :  { %831 = vmatmul.mubr.bf16.vlgmr.msra.gmra.mrb[0].mxu1 %v251_v35 }
 0x17b   :  { %835 = vmatpush3.bf16.msra.mxu1 %v923_v34  ;;  %850 = vmatprep.mubr.msk.bf16.mxu1 %vm1129_vm2, %v1128_v1 }
 0x17c   :  { %836 = vmatprep.subr.bf16.mxu1 %v1128_v1 }
 0x17f   :  { %837 = vmatpush3.bf16.msra.mxu1 %v924_v36 }
 0x180   :  { %838 = vmatprep.subr.bf16.mxu1 %v1128_v1 }
 0x183   :  { %839 = vmatpush3.bf16.msra.mxu1 %v925_v37 }
 0x184   :  { %840 = vmatprep.subr.bf16.mxu1 %v1128_v1 }
 0x187   :  { %841 = vmatpush3.bf16.msra.mxu1 %v926_v38 }
 0x188   :  { %842 = vmatprep.subr.bf16.mxu1 %v1128_v1 }
 0x18b   :  { %843 = vmatpush3.bf16.msra.mxu1 %v927_v39 }
 0x18c   :  { %844 = vmatprep.subr.bf16.mxu1 %v1128_v1 }
 0x18f   :  { %845 = vmatpush3.bf16.msra.mxu1 %v928_v40 }
 0x190   :  { %846 = vmatprep.subr.bf16.mxu1 %v1128_v1 }
 0x193   :  { %847 = vmatpush3.bf16.msra.mxu1 %v929_v41 }
 0x194   :  { %848 = vmatprep.subr.bf16.mxu1 %v1128_v1 }
 0x197   :  { %849 = vmatpush3.bf16.msra.mxu1 %v930_v42 }
 0x198   :  { %874 = vmatprep.subr.bf16.mxu1 %v1128_v1 }
 0x24d   :  { %v357_v47 = vpop.f32.mrb[0].mxu1 }
 0x24e   :  { %v358_v48 = vadd.f32 %v742_v46, %v357_v47  ;;  %v832_v49 = vpop.f32.mrb[1].mxu1 }
 0x24f   :  { %v360_v50 = vpop.f32.mrb[2].mxu1 }
 0x250   :  { %v363_v51 = vmul.f32 0.5, %v358_v48  ;;  %v833_v52 = vpop.f32.mrb[3].mxu1 }
 0x252   :  { %949 = vtanh.f32 %v363_v51 }
 0x25c   :  { %v950_v53 = vpop.eup %949 }
 0x25d   :  { %v365_v54 = vmul.f32 0.5, %v950_v53 }
 0x25f   :  { %v366_v55 = vadd.f32 0.5, %v365_v54 }
 0x261   :  { %v367_v56 = vpack.c.bf16 %v366_v55, %v366_v55 }
 0x263   :  { %851 = vmatmul.mubr.bf16.vlgmr.msra.gmra.mrb[4].mxu1 %v367_v56 }
 0x264   :  { %890 = vmatprep.mubr.msk.bf16.mxu1 %vm1129_vm2, %v1128_v1  ;;  %875 = vmatpush3.bf16.msra.mxu1 %v939_v62 }
 0x265   :  { %876 = vmatprep.subr.bf16.mxu1 %v1128_v1 }
 0x268   :  { %877 = vmatpush3.bf16.msra.mxu1 %v940_v63 }
 0x269   :  { %878 = vmatprep.subr.bf16.mxu1 %v1128_v1 }
 0x26c   :  { %879 = vmatpush3.bf16.msra.mxu1 %v941_v0 }
 0x26d   :  { %880 = vmatprep.subr.bf16.mxu1 %v1128_v1 }
 0x270   :  { %881 = vmatpush3.bf16.msra.mxu1 %v942_v13 }
 0x271   :  { %882 = vmatprep.subr.bf16.mxu1 %v1128_v1 }
 0x274   :  { %883 = vmatpush3.bf16.msra.mxu1 %v943_v14 }
 0x275   :  { %884 = vmatprep.subr.bf16.mxu1 %v1128_v1 }
 0x278   :  { %885 = vmatpush3.bf16.msra.mxu1 %v944_v15 }
 0x279   :  { %886 = vmatprep.subr.bf16.mxu1 %v1128_v1 }
 0x27c   :  { %887 = vmatpush3.bf16.msra.mxu1 %v945_v16 }
 0x27d   :  { %888 = vmatprep.subr.bf16.mxu1 %v1128_v1  ;;  %v769_v1 = vld [vmem:[%s1355_s10] ss:$0 sm:$0xff] }
 0x280   :  { %889 = vmatpush3.bf16.msra.mxu1 %v946_v17 }
 0x336   :  { %v473_v3 = vpop.f32.mrb[4].mxu1 }
 0x337   :  { %v474_v4 = vadd.f32 %v751_v2, %v473_v3  ;;  %v852_v5 = vpop.f32.mrb[5].mxu1 }
 0x338   :  { %v476_v6 = vpop.f32.mrb[6].mxu1 }
 0x339   :  { %v479_v7 = vmul.f32 0.5, %v474_v4  ;;  %v853_v8 = vpop.f32.mrb[7].mxu1 }
 0x33b   :  { %951 = vtanh.f32 %v479_v7 }
 0x345   :  { %v952_v9 = vpop.eup %951 }
 0x346   :  { %v481_v10 = vmul.f32 0.5, %v952_v9 }
 0x348   :  { %v482_v11 = vadd.f32 0.5, %v481_v10 }
 0x34a   :  { %v483_v12 = vpack.c.bf16 %v482_v11, %v482_v11 }
 0x34c   :  { %871 = vmatmul.mubr.bf16.vlgmr.msra.gmra.mrb[4].mxu0 %v483_v12 }
 0x41f   :  { %v589_v19 = vpop.f32.mrb[4].mxu0 }
 0x420   :  { %v590_v20 = vadd.f32 %v760_v18, %v589_v19  ;;  %v872_v21 = vpop.f32.mrb[5].mxu0 }
 0x421   :  { %v592_v22 = vpop.f32.mrb[6].mxu0 }
 0x422   :  { %v595_v23 = vmul.f32 0.5, %v590_v20  ;;  %v873_v24 = vpop.f32.mrb[7].mxu0 }
 0x424   :  { %953 = vtanh.f32 %v595_v23 }
 0x42e   :  { %v954_v25 = vpop.eup %953 }
 0x42f   :  { %v597_v26 = vmul.f32 0.5, %v954_v25 }
 0x431   :  { %v598_v27 = vadd.f32 0.5, %v597_v26 }
 0x433   :  { %v599_v28 = vpack.c.bf16 %v598_v27, %v598_v27 }
 0x435   :  { %891 = vmatmul.mubr.bf16.vlgmr.msra.gmra.mrb[8].mxu1 %v599_v28 }
 0x508   :  { %v705_v29 = vpop.f32.mrb[8].mxu1 }
 0x509   :  { %v706_v30 = vadd.f32 %v769_v1, %v705_v29  ;;  %v892_v31 = vpop.f32.mrb[9].mxu1 }
 0x50a   :  { %v708_v32 = vpop.f32.mrb[10].mxu1 }
 0x50b   :  { %v711_v33 = vpack.c.bf16 %v706_v30, %v706_v30  ;;  %v893_v34 = vpop.f32.mrb[11].mxu1 }
 0x50d   :  { %712 = vst [vmem:[#allocation13] sm:$0xf] %v711_v33 }
 0x50e   :  { %1098 = shalt.err (!%p1095_p10)
}
 0x50f   :  { %s1099_s10 = scalar_lea.hbm %s1356_s11, 64 }
 0x510   :  { %p1100_p11 = scmp.ne.s32.totalorder %s1356_s11, %s1099_s10  ;;  %p1103_p12 = scmp.lt.u32.totalorder %s1099_s10, %s1356_s11 }
 0x512   :  { %p1105_p13 = pnand %p1103_p12, %p1100_p11 }
 0x514   :  { %1108 = shalt.err (!%p1105_p13)
}
 0x515   :  { %722 = dma.vmem_to_hbm [thread:$0]  %s720_s13, 64, %s1356_s11, [#allocation4]  }
 0x516   :  { %1117 = dma.done.wait [#allocation4], 64  }
 0x517   :  { %1118 = vsyncadd [#allocation4], 4294967232 }
 0x518   :  { %726 = vsyncpa [#allocation3], 1 }
 0x519   :  { %727 = vsyncpa [#allocation6], 1 }
 0x51a   :  { %728 = vsyncpa [#allocation9], 1 }
 0x51b   :  { %729 = vsyncpa [#allocation12], 1 }
 0x51c   :  { %730 = vsyncpa [#allocation4], 1 }

</bundles_post_ra>
